<compile_context>
chip_gen: v6e
topology: v6e:2x2x1
jax: 0.10.0
libtpu: 0.0.40
codegen_flags: <defaults>
</compile_context>

<pallas_src>
import jax
import jax.numpy as jnp
from jax.experimental import pallas as pl
from jax.experimental.pallas import tpu as pltpu


def _round_up(a: int, b: int) -> int:
    return (a + b - 1) // b * b


def _fold_lora_into_weight(W, A, B, Q, P, scaling):
    """W_eff^T = W^T + scaling * A^T @ B^T @ Q^T @ P^T, computed in f32.

    Matches the module's unmerged forward:
      x @ W^T + s * (((x @ A^T) @ B^T) @ Q^T) @ P^T  ==  x @ W_eff^T
    PyTorch nn.Linear layouts: W [out,in], A [r,in], B [out,r], Q [r,out], P [out,r].
    """
    hi = jax.lax.Precision.HIGHEST
    f32 = jnp.float32
    Bt = B.astype(f32).T                                               # (r, out)
    Qt = Q.astype(f32).T                                               # (out, r)
    Pt = P.astype(f32).T                                               # (r, out)
    BQP = jnp.dot(jnp.dot(Bt, Qt, precision=hi), Pt, precision=hi)     # (r, out)
    delta_t = jnp.dot(A.astype(f32).T, BQP, precision=hi) * f32(scaling)  # (in, out)
    return W.astype(f32).T + delta_t                                   # (in, out)


def _pqba_kernel(x_ref, wt_ref, b_ref, o_ref, acc_ref):
    """One (tm, tn) output tile of x @ W_eff^T + bias, reduced over the K grid axis.

    x_ref  : (tm, tk) input tile                   (compute dtype, e.g. bf16)
    wt_ref : (tk, tn) folded-weight tile (W_eff^T) (compute dtype)
    b_ref  : (1,  tn) bias tile                    (f32)
    o_ref  : (tm, tn) output tile
    acc_ref: (tm, tn) f32 accumulator
    """
    k = pl.program_id(2)

    @pl.when(k == 0)
    def _():
        acc_ref[...] = jnp.zeros_like(acc_ref)

    acc_ref[...] += jnp.dot(x_ref[...], wt_ref[...],
                            preferred_element_type=jnp.float32)

    @pl.when(k == pl.num_programs(2) - 1)
    def _():
        o_ref[...] = (acc_ref[...] + b_ref[...]).astype(o_ref.dtype)


def prepare_pqba_params(W, b, A, B, Q, P, scaling, *,
                        tn=512, tk=1024, compute_dtype=jnp.bfloat16):
    """One-time weight preparation (fold + transpose + pad + cast).

    Call once outside the hot path; the returned dict is reused by
    `pqba_linear_apply` so no per-call weight transpose / copy is issued.
    """
    out_features, in_features = W.shape

    tn_eff = min(tn, _round_up(out_features, 128))   # lane-dense output tile
    tk_eff = min(tk, _round_up(in_features, 128))    # lane-dense reduction tile
    N_pad = _round_up(out_features, tn_eff)
    K_pad = _round_up(in_features, tk_eff)

    wt_eff = _fold_lora_into_weight(W, A, B, Q, P, scaling)            # (in, out) f32
    wt_p = jnp.pad(wt_eff, ((0, K_pad - in_features),
                            (0, N_pad - out_features))).astype(compute_dtype)
    b_p = jnp.pad(b.astype(jnp.float32).reshape(1, out_features),
                  ((0, 0), (0, N_pad - out_features)))

    return {
        "wt": wt_p, "bias": b_p,
        "in_features": in_features, "out_features": out_features,
        "tn": tn_eff, "tk": tk_eff, "N_pad": N_pad, "K_pad": K_pad,
        "compute_dtype": compute_dtype,
    }


def pqba_linear_apply(x, params, *, tm=512, out_dtype=None,
                      vmem_limit_bytes=48 * 1024 * 1024):
    """Hot path: pad/cast x and run the fused matmul+bias kernel on prepared weights."""
    in_features = params["in_features"]
    out_features = params["out_features"]
    tn_eff, tk_eff = params["tn"], params["tk"]
    N_pad, K_pad = params["N_pad"], params["K_pad"]
    compute_dtype = params["compute_dtype"]

    assert x.shape[-1] == in_features
    lead = x.shape[:-1]
    x2 = x.reshape(-1, in_features)
    M = x2.shape[0]
    out_dtype = out_dtype if out_dtype is not None else x.dtype

    # M tiling: multiples of 16 (bf16 sublane packing), clamped to the problem.
    tm_eff = min(tm, _round_up(M, 16))
    M_pad = _round_up(M, tm_eff)

    x_p = jnp.pad(x2, ((0, M_pad - M), (0, K_pad - in_features))).astype(compute_dtype)

    grid = (M_pad // tm_eff, N_pad // tn_eff, K_pad // tk_eff)

    flops = 2 * M_pad * K_pad * N_pad
    bytes_accessed = int(
        x_p.size * x_p.dtype.itemsize
        + params["wt"].size * params["wt"].dtype.itemsize
        + params["bias"].size * params["bias"].dtype.itemsize
        + M_pad * N_pad * jnp.dtype(out_dtype).itemsize)

    out = pl.pallas_call(
        _pqba_kernel,
        out_shape=jax.ShapeDtypeStruct((M_pad, N_pad), out_dtype),
        grid_spec=pltpu.PrefetchScalarGridSpec(
            num_scalar_prefetch=0,
            grid=grid,
            in_specs=[
                pl.BlockSpec((tm_eff, tk_eff), lambda i, j, k: (i, k)),  # x tile
                pl.BlockSpec((tk_eff, tn_eff), lambda i, j, k: (k, j)),  # W_eff^T tile
                pl.BlockSpec((1, tn_eff), lambda i, j, k: (0, j)),       # bias tile
            ],
            out_specs=pl.BlockSpec((tm_eff, tn_eff), lambda i, j, k: (i, j)),
            scratch_shapes=[pltpu.VMEM((tm_eff, tn_eff), jnp.float32)],
        ),
        compiler_params=pltpu.CompilerParams(
            dimension_semantics=("parallel", "parallel", "arbitrary"),
            vmem_limit_bytes=vmem_limit_bytes,
        ),
        cost_estimate=pl.CostEstimate(
            flops=flops, transcendentals=0, bytes_accessed=bytes_accessed),
    )(x_p, params["wt"], params["bias"])

    out = out[:M, :out_features]
    return out.reshape(*lead, out_features)


def pqba_linear_forward(x, W, b, A, B, Q, P, scaling, *,
                        tm=512, tn=512, tk=1024,
                        compute_dtype=jnp.bfloat16, out_dtype=None,
                        vmem_limit_bytes=48 * 1024 * 1024):
    """Convenience: prepare + apply in one call (prefer splitting these in real use)."""
    params = prepare_pqba_params(W, b, A, B, Q, P, scaling,
                                 tn=tn, tk=tk, compute_dtype=compute_dtype)
    return pqba_linear_apply(x, params, tm=tm, out_dtype=out_dtype,
                             vmem_limit_bytes=vmem_limit_bytes)


if __name__ == "__main__":
    hi = jax.lax.Precision.HIGHEST

    def _q(a):  # bf16-quantize helper mirroring the kernel's compute dtype
        return a.astype(jnp.bfloat16).astype(jnp.float32)

    def _check(key, *, batch, seq, in_features, out_features, r, lora_alpha,
               tn, tk, tm, f32_atol):
        scaling = lora_alpha / r   # use_rslora=False path
        kx, kw, kb, ka, kbb, kq, kp = jax.random.split(key, 7)

        x = jax.random.normal(kx, (batch, seq, in_features), dtype=jnp.float32)
        # PyTorch nn.Linear weight layout [out, in].
        W = jax.random.normal(kw, (out_features, in_features), dtype=jnp.float32) * 0.1
        bias = jax.random.normal(kb, (out_features,), dtype=jnp.float32) * 0.1
        A = jax.random.normal(ka, (r, in_features), dtype=jnp.float32) * 0.1     # lora_A
        B = jax.random.normal(kbb, (out_features, r), dtype=jnp.float32) * 0.1   # lora_B
        Q = jax.random.normal(kq, (r, out_features), dtype=jnp.float32) * 0.1    # transform q
        P = jax.random.normal(kp, (out_features, r), dtype=jnp.float32) * 0.1    # transform p
        # TODO(synk): lora_dropout (p=0.0 in the default config) is identity; no RNG dropout applied.

        # One-time weight prep (outside the hot path), then the fused kernel.
        params = prepare_pqba_params(W, bias, A, B, Q, P, scaling, tn=tn, tk=tk)
        out = jax.block_until_ready(pqba_linear_apply(x, params, tm=tm))
        assert out.shape == (batch, seq, out_features)

        x2 = x.reshape(-1, in_features)

        # Full-f32 reference of the exact module math (loose; kernel uses bf16 MXU inputs).
        ref_base = jnp.dot(x2, W.T, precision=hi) + bias
        ref_lora = jnp.dot(jnp.dot(jnp.dot(jnp.dot(
            x2, A.T, precision=hi), B.T, precision=hi), Q.T, precision=hi),
            P.T, precision=hi)
        ref = (ref_base + scaling * ref_lora).reshape(batch, seq, out_features)

        # bf16-quantized reference mirroring the kernel's compute path (tight check).
        wt_eff = _fold_lora_into_weight(W, A, B, Q, P, scaling)
        ref_q = (jnp.dot(_q(x2), _q(wt_eff), precision=hi)
                 + bias).reshape(batch, seq, out_features)

        assert jnp.allclose(out, ref_q, atol=5e-3, rtol=5e-3), \
            "mismatch vs bf16-matched reference"
        assert jnp.allclose(out, ref, atol=f32_atol, rtol=5e-2), \
            "mismatch vs f32 reference"

    key = jax.random.PRNGKey(0)
    k1, k2 = jax.random.split(key)

    # Small, module-consistent shapes (single-tile path).
    _check(k1, batch=2, seq=8, in_features=32, out_features=32, r=8,
           lora_alpha=16, tn=512, tk=1024, tm=512, f32_atol=5e-2)

    # Slightly larger shapes with non-divisible dims: exercises zero-padding,
    # the K-axis f32 accumulator (grid k=3) and the parallel N axis (grid j=2).
    _check(k2, batch=3, seq=16, in_features=640, out_features=384, r=16,
           lora_alpha=32, tn=256, tk=256, tm=512, f32_atol=1e-1)

    print("KERNEL_OK")
</pallas_src>

<mosaic_0001>
module attributes {stable_mosaic.version = 11 : i64} {
  func.func @_pqba_kernel(%arg0: i32, %arg1: i32, %arg2: i32, %arg3: memref<16x128xbf16, #tpu.memory_space<vmem>>, %arg4: memref<128x128xbf16, #tpu.memory_space<vmem>>, %arg5: memref<1x128xf32, #tpu.memory_space<vmem>>, %arg6: memref<16x128xf32, #tpu.memory_space<vmem>>, %arg7: memref<16x128xf32, #tpu.memory_space<vmem>>) attributes {dimension_semantics = [#tpu.dimension_semantics<parallel>, #tpu.dimension_semantics<parallel>, #tpu.dimension_semantics<arbitrary>], iteration_bounds = array<i64: 1, 1, 1>, scalar_prefetch = 0 : i64, scratch_operands = 1 : i64, tpu.core_type = #tpu.core_type<tc>, window_params = [{transform_indices = @transform_0, window_bounds = array<i64: 16, 128>}, {transform_indices = @transform_1, window_bounds = array<i64: 128, 128>}, {transform_indices = @transform_2, window_bounds = array<i64: 1, 128>}, {transform_indices = @transform_3, window_bounds = array<i64: 16, 128>}]} {
    %c0_i32 = arith.constant 0 : i32
    %0 = arith.cmpi eq, %arg2, %c0_i32 : i32
    %1 = arith.extui %0 : i1 to i32
    %c0_i32_0 = arith.constant 0 : i32
    %2 = arith.cmpi ne, %1, %c0_i32_0 : i32
    scf.if %2 {
      %cst_10 = arith.constant 0.000000e+00 : f32
      %12 = vector.broadcast %cst_10 : f32 to vector<16x128xf32>
      %c0_11 = arith.constant 0 : index
      %c0_12 = arith.constant 0 : index
      %13 = vector.load %arg7[%c0_11, %c0_12] : memref<16x128xf32, #tpu.memory_space<vmem>>, vector<16x128xf32>
      tpu.vector_store %arg7[%c0_11, %c0_12], %12 {strides = array<i32>} : memref<16x128xf32, #tpu.memory_space<vmem>>, vector<16x128xf32>,
    } else {
    }
    %c0 = arith.constant 0 : index
    %c0_1 = arith.constant 0 : index
    %3 = vector.load %arg7[%c0, %c0_1] : memref<16x128xf32, #tpu.memory_space<vmem>>, vector<16x128xf32>
    %c0_2 = arith.constant 0 : index
    %c0_3 = arith.constant 0 : index
    %4 = vector.load %arg3[%c0_2, %c0_3] : memref<16x128xbf16, #tpu.memory_space<vmem>>, vector<16x128xbf16>
    %c0_4 = arith.constant 0 : index
    %c0_5 = arith.constant 0 : index
    %5 = vector.load %arg4[%c0_4, %c0_5] : memref<128x128xbf16, #tpu.memory_space<vmem>>, vector<128x128xbf16>
    %cst = arith.constant dense<0.000000e+00> : vector<16x128xf32>
    %6 = tpu.matmul %4, %5, %cst {dimension_numbers = #tpu.dot_dimension_numbers<[1], [0], [0], [1], [0, 0, 1, 1], [], []>} : vector<16x128xbf16>, vector<128x128xbf16>, vector<16x128xf32> -> vector<16x128xf32>
    %7 = arith.addf %3, %6 : vector<16x128xf32>
    %c0_6 = arith.constant 0 : index
    %c0_7 = arith.constant 0 : index
    %8 = vector.load %arg7[%c0_6, %c0_7] : memref<16x128xf32, #tpu.memory_space<vmem>>, vector<16x128xf32>
    tpu.vector_store %arg7[%c0_6, %c0_7], %7 {strides = array<i32>} : memref<16x128xf32, #tpu.memory_space<vmem>>, vector<16x128xf32>,
    %c0_i32_8 = arith.constant 0 : i32
    %9 = arith.cmpi eq, %arg2, %c0_i32_8 : i32
    %10 = arith.extui %9 : i1 to i32
    %c0_i32_9 = arith.constant 0 : i32
    %11 = arith.cmpi ne, %10, %c0_i32_9 : i32
    scf.if %11 {
      %c0_10 = arith.constant 0 : index
      %c0_11 = arith.constant 0 : index
      %12 = vector.load %arg7[%c0_10, %c0_11] : memref<16x128xf32, #tpu.memory_space<vmem>>, vector<16x128xf32>
      %c0_12 = arith.constant 0 : index
      %c0_13 = arith.constant 0 : index
      %13 = vector.load %arg5[%c0_12, %c0_13] : memref<1x128xf32, #tpu.memory_space<vmem>>, vector<1x128xf32>
      %14 = vector.broadcast %13 : vector<1x128xf32> to vector<16x128xf32>
      %15 = arith.addf %12, %14 : vector<16x128xf32>
      %c0_14 = arith.constant 0 : index
      %c0_15 = arith.constant 0 : index
      %16 = vector.load %arg6[%c0_14, %c0_15] : memref<16x128xf32, #tpu.memory_space<vmem>>, vector<16x128xf32>
      tpu.vector_store %arg6[%c0_14, %c0_15], %15 {strides = array<i32>} : memref<16x128xf32, #tpu.memory_space<vmem>>, vector<16x128xf32>,
    } else {
    }
    return
  }
  func.func @transform_0(%arg0: i32, %arg1: i32, %arg2: i32) -> (i32, i32) {
    %c0_i32 = arith.constant 0 : i32
    return %arg0, %arg2 : i32, i32
  }
  func.func @transform_1(%arg0: i32, %arg1: i32, %arg2: i32) -> (i32, i32) {
    %c0_i32 = arith.constant 0 : i32
    return %arg2, %arg1 : i32, i32
  }
  func.func @transform_2(%arg0: i32, %arg1: i32, %arg2: i32) -> (i32, i32) {
    %c0_i32 = arith.constant 0 : i32
    %c0_i32_0 = arith.constant 0 : i32
    return %c0_i32, %arg1 : i32, i32
  }
  func.func @transform_3(%arg0: i32, %arg1: i32, %arg2: i32) -> (i32, i32) {
    %c0_i32 = arith.constant 0 : i32
    return %arg0, %arg1 : i32, i32
  }
}

</mosaic_0001>

<bundles_post_ra>
// kernel: tpu_custom_call.1
= control target key start
LH: loop header
LB: loop body
LE: loop exit
PB: predicated region body
PF: predicated region fallthrough
CT: control target
= control target key end

     0   :  { %8 = vsyncpa [#allocation4], 0  ;;  %s367_s0 = inlined_call_operand.hbm [shape: bf16[16,128], index: 0, kind: input, shape index: {}]   ;;  %s368_s1 = inlined_call_operand.hbm [shape: bf16[128,128], index: 1, kind: input, shape index: {}]   ;;  %s369_s2 = inlined_call_operand.vmem [shape: f32[1,128], index: 2, kind: input, shape index: {}]   ;;  %s370_s3 = inlined_call_operand.hbm [shape: f32[16,128], index: 3, kind: output, shape index: {}]  }
   0x1   :  { %9 = vsyncpa [#allocation7], 0 }
   0x2   :  { %10 = vsyncpa [#allocation5], 0  ;;  %s326_s12 = smov [#allocation3]  }
   0x3   :  { %s16_s13 = sshll.u32 %s326_s12, 4  ;;  %s17_s13 = int_to_ptr.vmem [resolvable:$true] %s16_s13 }
   0x4   :  { %s268_s14 = scalar_lea.vmem %s17_s13, 128  ;;  %p273_p1 = scmp.lt.s32.totalorder %s17_s13, %s17_s13 }
   0x5   :  { %p269_p0 = scmp.ne.s32.totalorder %s17_s13, %s268_s14  ;;  %p274_p2 = scmp.lt.s32.totalorder %s268_s14, %s268_s14 }
   0x7   :  { %p275_p3 = por %p274_p2, %p273_p1 }
   0x9   :  { %p276_p4 = pnand %p275_p3, %p269_p0 }
   0xb   :  { %279 = shalt.err (!%p276_p4)
}
   0xc   :  { %s327_s15 = smov 64   ;;  %s328_s16 = smov 4  }
   0xd   :  { %22 = dma.hbm_to_vmem [thread:$0]  %s367_s0, 128, %s17_s13, [#allocation4], %s327_s15, %s327_s15, %s328_s16  }
   0xe   :  { %s329_s19 = smov [#allocation6]  }
   0xf   :  { %s28_s20 = sshll.u32 %s329_s19, 4  ;;  %s29_s20 = int_to_ptr.vmem [resolvable:$true] %s28_s20 }
  0x10   :  { %s288_s21 = scalar_lea.vmem %s29_s20, 1024  ;;  %p293_p6 = scmp.lt.s32.totalorder %s29_s20, %s29_s20 }
  0x11   :  { %p289_p5 = scmp.ne.s32.totalorder %s29_s20, %s288_s21  ;;  %p294_p7 = scmp.lt.s32.totalorder %s288_s21, %s288_s21 }
  0x13   :  { %p295_p8 = por %p294_p7, %p293_p6 }
  0x15   :  { %p296_p9 = pnand %p295_p8, %p289_p5 }
  0x17   :  { %299 = shalt.err (!%p296_p9)
}
  0x18   :  { %34 = dma.hbm_to_vmem [thread:$0]  %s368_s1, 1024, %s29_s20, [#allocation7], %s327_s15, %s327_s15, %s328_s16  }
  0x19   :  { %320 = dma.done.wait [#allocation4], 128  }
  0x1a   :  { %321 = vsyncadd [#allocation4], 4294967168 }
  0x1b   :  { %322 = dma.done.wait [#allocation7], 1024  }
  0x1c   :  { %323 = vsyncadd [#allocation7], 4294966272  ;;  %v330_v0 = vmov 0.0   ;;  %vm331_vm0 = vmmov 0   ;;  %v251_v1 = vld [vmem:[#allocation6 + $0x38] sm:$0xff]   ;;  %v252_v2 = vld [vmem:[#allocation6 + $0x30] sm:$0xff]  }
  0x1d   :  { %222 = vmatprep.subr.bf16.mxu0 %v330_v0  ;;  %238 = vmatprep.mubr.msk.bf16.mxu0 %vm331_vm0, %v330_v0  ;;  %v253_v3 = vld [vmem:[#allocation6 + $0x28] sm:$0xff]   ;;  %v254_v4 = vld [vmem:[#allocation6 + $0x20] sm:$0xff]   ;;  %v255_v5 = vld [vmem:[#allocation6 + $0x18] sm:$0xff]   ;;  %s332_s24 = smov [#allocation8]  }
  0x1e   :  { %223 = vmatpush3.bf16.msra.mxu0 %v251_v1  ;;  %v256_v6 = vld [vmem:[#allocation6 + $0x10] sm:$0xff]   ;;  %v257_v7 = vld [vmem:[#allocation6 + $0x8] sm:$0xff]   ;;  %v258_v8 = vld [vmem:[#allocation6] sm:$0xff]   ;;  %s190_s25 = sshll.u32 %s332_s24, 4  ;;  %s191_s25 = int_to_ptr.vmem [resolvable:$true] %s190_s25 }
  0x1f   :  { %224 = vmatprep.subr.bf16.mxu0 %v330_v0  ;;  %v259_v9 = vld [vmem:[#allocation3] sm:$0xff]   ;;  %s300_s26 = scalar_lea.vmem %s191_s25, 256  ;;  %p305_p11 = scmp.lt.s32.totalorder %s191_s25, %s191_s25 }
  0x20   :  { %v212_v10 = vld [vmem:[%s369_s2] ss:$0 sm:$0xff]  ;;  %p301_p10 = scmp.ne.s32.totalorder %s191_s25, %s300_s26  ;;  %p306_p12 = scmp.lt.s32.totalorder %s300_s26, %s300_s26 }
  0x22   :  { %225 = vmatpush3.bf16.msra.mxu0 %v252_v2  ;;  %p307_p13 = por %p306_p12, %p305_p11 }
  0x23   :  { %226 = vmatprep.subr.bf16.mxu0 %v330_v0 }
  0x24   :  { %p308_p0 = pnand %p307_p13, %p301_p10 }
  0x26   :  { %227 = vmatpush3.bf16.msra.mxu0 %v253_v3 }
  0x27   :  { %228 = vmatprep.subr.bf16.mxu0 %v330_v0 }
  0x2a   :  { %229 = vmatpush3.bf16.msra.mxu0 %v254_v4 }
  0x2b   :  { %230 = vmatprep.subr.bf16.mxu0 %v330_v0 }
  0x2e   :  { %231 = vmatpush3.bf16.msra.mxu0 %v255_v5 }
  0x2f   :  { %232 = vmatprep.subr.bf16.mxu0 %v330_v0 }
  0x32   :  { %233 = vmatpush3.bf16.msra.mxu0 %v256_v6 }
  0x33   :  { %234 = vmatprep.subr.bf16.mxu0 %v330_v0 }
  0x36   :  { %235 = vmatpush3.bf16.msra.mxu0 %v257_v7 }
  0x37   :  { %236 = vmatprep.subr.bf16.mxu0 %v330_v0 }
  0x3a   :  { %237 = vmatpush3.bf16.msra.mxu0 %v258_v8 }
  0x3d   :  { %239 = vmatmul.mubr.bf16.vlgmr.msra.gmra.mxu0 %v259_v9 }
  0xfd   :  { %v158_v11 = vpop.f32.mrf.mxu0 }
  0xfe   :  { %v181_v12 = vadd.f32 %v212_v10, %v158_v11 }
  0xff   :  { %v240_v13 = vpop.f32.mrf.mxu0 }
 0x100   :  { %183 = vst [vmem:[#allocation8] sm:$0xff] %v181_v12 }
 0x101   :  { %v161_v14 = vpop.f32.mrf.mxu0 }
 0x102   :  { %v182_v15 = vadd.f32 %v212_v10, %v161_v14 }
 0x103   :  { %v241_v16 = vpop.f32.mrf.mxu0 }
 0x104   :  { %184 = vst [vmem:[#allocation8 + $0x8] sm:$0xff] %v182_v15 }
 0x105   :  { %311 = shalt.err (!%p308_p0)
}
 0x106   :  { %s333_s27 = smov 128   ;;  %s334_s2 = smov 8  }
 0x107   :  { %196 = dma.vmem_to_hbm [thread:$0]  %s191_s25, 256, %s370_s3, [#allocation5], %s333_s27, %s333_s27, %s334_s2  }
 0x108   :  { %324 = dma.done.wait [#allocation5], 256  }
 0x109   :  { %325 = vsyncadd [#allocation5], 4294967040 }
 0x10a   :  { %200 = vsyncpa [#allocation4], 1 }
 0x10b   :  { %201 = vsyncpa [#allocation7], 1 }
 0x10c   :  { %202 = vsyncpa [#allocation5], 1 }

</bundles_post_ra>
